<compile_context>
chip_gen: v5e
topology: v5e:2x2
jax: 0.10.0
libtpu: 0.0.40
codegen_flags: <defaults>
</compile_context>

<pallas_src>
import functools

import jax
import jax.numpy as jnp
from jax.experimental import pallas as pl
from jax.experimental.pallas import tpu as pltpu


def _round_up(x, m):
    return -(-x // m) * m


def _round_down(x, m):
    return (x // m) * m


@functools.lru_cache(maxsize=1)
def _tpu_budgets():
    """(vmem_limit_bytes, block_budget_bytes) derived from the actual chip."""
    vmem_limit = 48 << 20                      # safe on every generation (v7x: 64 MiB/TC)
    try:
        cap = int(getattr(pltpu.get_tpu_info(), "vmem_capacity_bytes", 0) or 0)
        if cap >= (128 << 20):                 # v5e / v6e: 128 MiB physical VMEM
            vmem_limit = 64 << 20
        elif cap > 0:                          # v7x-like: leave headroom below 64 MiB
            vmem_limit = min(48 << 20, max(cap - (16 << 20), 16 << 20))
    except Exception:
        pass
    # f32-equivalent bytes for one pipelined x block; ~6x of this lives in VMEM
    # (2x double-buffered input + 2x output blocks + in-kernel f32 temporaries).
    block_budget = vmem_limit // 8
    return vmem_limit, block_budget


# ----------------------------------------------------------------------------
# Kernels
# ----------------------------------------------------------------------------
def _group_norm_kernel(x_ref, g_ref, b_ref, o_ref, *, eps, inv_count):
    """x_ref: (TN, 1, Cg, HW); g_ref/b_ref: (1, 1, Cg, 1); o_ref like x_ref."""
    x = x_ref[...].astype(jnp.float32)
    s = jnp.sum(x, axis=3, keepdims=True)
    s = jnp.sum(s, axis=2, keepdims=True)                # (TN,1,1,1)
    q = jnp.sum(x * x, axis=3, keepdims=True)
    q = jnp.sum(q, axis=2, keepdims=True)
    mean = s * inv_count
    var = jnp.maximum(q * inv_count - mean * mean, 0.0)  # single-pass: one live f32 copy
    scale = jax.lax.rsqrt(var + eps) * g_ref[...]        # (TN,1,Cg,1)
    shift = b_ref[...] - mean * scale
    o_ref[...] = (x * scale + shift).astype(o_ref.dtype)


def _group_norm_rows_kernel(x_ref, g_ref, b_ref, o_ref, *, eps, inv_count):
    """Small-Cg lane-dense layout. x_ref: (TN, G, L=Cg*HW); g/b: (1, G, L)."""
    x = x_ref[...].astype(jnp.float32)
    s = jnp.sum(x, axis=2, keepdims=True)                # (TN,G,1)
    q = jnp.sum(x * x, axis=2, keepdims=True)
    mean = s * inv_count
    var = jnp.maximum(q * inv_count - mean * mean, 0.0)
    inv = jax.lax.rsqrt(var + eps)
    o_ref[...] = (((x - mean) * inv) * g_ref[...] + b_ref[...]).astype(o_ref.dtype)


def _bn_fused_kernel(x_ref, g_ref, b_ref, o_ref, *, eps, inv_count):
    """x_ref: (N, TC, HW); g_ref/b_ref: (1, TC, 1); o_ref like x_ref."""
    x = x_ref[...].astype(jnp.float32)
    s = jnp.sum(x, axis=2, keepdims=True)
    s = jnp.sum(s, axis=0, keepdims=True)                # (1,TC,1)
    q = jnp.sum(x * x, axis=2, keepdims=True)
    q = jnp.sum(q, axis=0, keepdims=True)
    mean = s * inv_count
    var = jnp.maximum(q * inv_count - mean * mean, 0.0)
    scale = g_ref[...] * jax.lax.rsqrt(var + eps)
    shift = b_ref[...] - mean * scale
    o_ref[...] = (x * scale + shift).astype(o_ref.dtype)


def _bn_stats_kernel(x_ref, sum_ref, sq_ref, *, hw_total, thw):
    """Streamed per-channel sum / sum-of-squares accumulation.

    x_ref: (N, TC, THW); sum_ref/sq_ref: (1, TC, 1) f32 accumulators (revisited
    across the HW-chunk grid axis). Ragged-tail masking only on the last chunk.
    """
    k = pl.program_id(1)
    n_hw = pl.num_programs(1)

    @pl.when(k == 0)
    def _init():
        sum_ref[...] = jnp.zeros_like(sum_ref)
        sq_ref[...] = jnp.zeros_like(sq_ref)

    x = x_ref[...].astype(jnp.float32)

    def _acc(xv):
        s = jnp.sum(xv, axis=2, keepdims=True)
        sum_ref[...] += jnp.sum(s, axis=0, keepdims=True)
        q = jnp.sum(xv * xv, axis=2, keepdims=True)
        sq_ref[...] += jnp.sum(q, axis=0, keepdims=True)

    if hw_total % thw != 0:
        last = n_hw - 1

        @pl.when(k != last)
        def _full():
            _acc(x)

        @pl.when(k == last)
        def _tail():
            col = k * thw + jax.lax.broadcasted_iota(jnp.int32, (1, 1, thw), 2)
            _acc(jnp.where(col < hw_total, x, 0.0))
    else:
        _acc(x)


def _gn_stats_kernel(x_ref, sum_ref, sq_ref, *, hw_total, thw):
    """Streamed per-(sample, group) stats. x_ref: (1, 1, Cg, THW); sums: (1,1,1,1)."""
    k = pl.program_id(2)
    n_hw = pl.num_programs(2)

    @pl.when(k == 0)
    def _init():
        sum_ref[...] = jnp.zeros_like(sum_ref)
        sq_ref[...] = jnp.zeros_like(sq_ref)

    x = x_ref[...].astype(jnp.float32)

    def _acc(xv):
        s = jnp.sum(xv, axis=3, keepdims=True)
        sum_ref[...] += jnp.sum(s, axis=2, keepdims=True)
        q = jnp.sum(xv * xv, axis=3, keepdims=True)
        sq_ref[...] += jnp.sum(q, axis=2, keepdims=True)

    if hw_total % thw != 0:
        last = n_hw - 1

        @pl.when(k != last)
        def _full():
            _acc(x)

        @pl.when(k == last)
        def _tail():
            col = k * thw + jax.lax.broadcasted_iota(jnp.int32, (1, 1, 1, thw), 3)
            _acc(jnp.where(col < hw_total, x, 0.0))
    else:
        _acc(x)


def _affine_apply_kernel(x_ref, scale_ref, shift_ref, o_ref):
    """Rank-generic y = x*scale + shift (scale/shift broadcast along the last axis)."""
    x = x_ref[...].astype(jnp.float32)
    o_ref[...] = (x * scale_ref[...] + shift_ref[...]).astype(o_ref.dtype)


# ----------------------------------------------------------------------------
# Norm variants (glue is reshapes only — no transposes, no tiled affine arrays)
# ----------------------------------------------------------------------------
def group_norm(x, gamma, beta, num_groups, eps=1e-5, block_budget_bytes=None):
    """nn.GroupNorm forward on NC... input (any number of spatial dims)."""
    N, C = x.shape[0], x.shape[1]
    HW = 1
    for d in x.shape[2:]:
        HW *= d
    G = num_groups
    assert C % G == 0
    Cg = C // G

    vmem_limit, default_budget = _tpu_budgets()
    budget = default_budget if block_budget_bytes is None else block_budget_bytes
    inv_count = 1.0 / float(Cg * HW)

    # ---- small-Cg lane-dense "row" layout: fold Cg into the lane axis --------
    # A (Cg<8, HW) tile wastes >=75% of the sublanes; (G, Cg*HW) blocks are
    # dense when G >= 8 (one row per (sample, group)).
    L = Cg * HW
    row_slab_bytes = _round_up(G, 8) * _round_up(L, 128) * 4        # f32 per sample
    if Cg < 8 and G >= 8 and row_slab_bytes <= budget:
        x3 = x.reshape(N, G, L)                                      # pure reshape
        g3 = jnp.broadcast_to(gamma.astype(jnp.float32).reshape(1, G, Cg, 1),
                              (1, G, Cg, HW)).reshape(1, G, L)
        b3 = jnp.broadcast_to(beta.astype(jnp.float32).reshape(1, G, Cg, 1),
                              (1, G, Cg, HW)).reshape(1, G, L)
        tn = max(1, min(N, budget // max(row_slab_bytes, 1)))
        if N >= 2 and pl.cdiv(N, tn) < 2:         # >=2 parallel steps (v7x megacore)
            tn = max(1, N // 2)
        kern = functools.partial(_group_norm_rows_kernel, eps=float(eps),
                                 inv_count=inv_count)
        y = pl.pallas_call(
            kern,
            out_shape=jax.ShapeDtypeStruct(x3.shape, x.dtype),
            grid=(pl.cdiv(N, tn),),
            in_specs=[
                pl.BlockSpec((tn, G, L), lambda n: (n, 0, 0)),
                pl.BlockSpec((1, G, L), lambda n: (0, 0, 0)),   # constant -> fetched once
                pl.BlockSpec((1, G, L), lambda n: (0, 0, 0)),
            ],
            out_specs=pl.BlockSpec((tn, G, L), lambda n: (n, 0, 0)),
            compiler_params=pltpu.CompilerParams(
                dimension_semantics=("parallel",),
                vmem_limit_bytes=vmem_limit),
        )(x3, g3, b3)
        return y.reshape(x.shape)

    x4 = x.reshape(N, G, Cg, HW)                          # pure reshape (NCHW contiguous)
    g4 = gamma.astype(jnp.float32).reshape(1, G, Cg, 1)   # per-channel only (tiny)
    b4 = beta.astype(jnp.float32).reshape(1, G, Cg, 1)

    slab_bytes = _round_up(Cg, 8) * _round_up(HW, 128) * 4          # f32, one (Cg,HW) slab

    if slab_bytes <= budget:
        # ------------------------- fused single-pass path -------------------------
        tn = max(1, min(N, budget // max(slab_bytes, 1)))
        if G == 1 and N >= 2 and pl.cdiv(N, tn) < 2:
            tn = max(1, N // 2)                   # keep >=2 parallel steps on v7x
        kern = functools.partial(_group_norm_kernel, eps=float(eps),
                                 inv_count=inv_count)
        y = pl.pallas_call(
            kern,
            out_shape=jax.ShapeDtypeStruct(x4.shape, x.dtype),
            grid=(G, pl.cdiv(N, tn)),             # group axis outermost: gamma/beta
            in_specs=[                            # DMA'd once per group, not per step
                pl.BlockSpec((tn, 1, Cg, HW), lambda g, n: (n, g, 0, 0)),
                pl.BlockSpec((1, 1, Cg, 1), lambda g, n: (0, g, 0, 0)),
                pl.BlockSpec((1, 1, Cg, 1), lambda g, n: (0, g, 0, 0)),
            ],
            out_specs=pl.BlockSpec((tn, 1, Cg, HW), lambda g, n: (n, g, 0, 0)),
            compiler_params=pltpu.CompilerParams(
                dimension_semantics=("parallel", "parallel"),
                vmem_limit_bytes=vmem_limit),
        )(x4, g4, b4)
        return y.reshape(x.shape)

    # ------------- streamed two-pass fallback (huge (Cg, HW) slabs) -------------
    per_col_bytes = _round_up(Cg, 8) * 4
    thw = max(128, _round_down(budget // max(per_col_bytes, 1), 128))
    if thw >= HW:
        thw = HW
    n_hw = pl.cdiv(HW, thw)

    stats_kern = functools.partial(_gn_stats_kernel, hw_total=HW, thw=thw)
    s, q = pl.pallas_call(
        stats_kern,
        out_shape=(jax.ShapeDtypeStruct((N, G, 1, 1), jnp.float32),
                   jax.ShapeDtypeStruct((N, G, 1, 1), jnp.float32)),
        grid=(N, G, n_hw),
        in_specs=[pl.BlockSpec((1, 1, Cg, thw), lambda n, g, k: (n, g, 0, k))],
        out_specs=(pl.BlockSpec((1, 1, 1, 1), lambda n, g, k: (n, g, 0, 0)),
                   pl.BlockSpec((1, 1, 1, 1), lambda n, g, k: (n, g, 0, 0))),
        compiler_params=pltpu.CompilerParams(
            dimension_semantics=("parallel", "parallel", "arbitrary"),
            vmem_limit_bytes=vmem_limit),
    )(x4)

    count = float(Cg * HW)
    mean = s / count
    var = jnp.maximum(q / count - mean * mean, 0.0)
    scale = jax.lax.rsqrt(var + eps) * g4                 # (N,G,Cg,1) — tiny XLA ops
    shift = b4 - mean * scale

    y = pl.pallas_call(
        _affine_apply_kernel,
        out_shape=jax.ShapeDtypeStruct(x4.shape, x.dtype),
        grid=(N, G, n_hw),
        in_specs=[
            pl.BlockSpec((1, 1, Cg, thw), lambda n, g, k: (n, g, 0, k)),
            pl.BlockSpec((1, 1, Cg, 1), lambda n, g, k: (n, g, 0, 0)),
            pl.BlockSpec((1, 1, Cg, 1), lambda n, g, k: (n, g, 0, 0)),
        ],
        out_specs=pl.BlockSpec((1, 1, Cg, thw), lambda n, g, k: (n, g, 0, k)),
        compiler_params=pltpu.CompilerParams(
            dimension_semantics=("parallel", "parallel", "parallel"),
            vmem_limit_bytes=vmem_limit),
    )(x4, scale, shift)
    return y.reshape(x.shape)


def batch_norm(x, gamma, beta, eps=1e-5, block_budget_bytes=None):
    """nn.BatchNorm2d/3d forward with training-mode (mini-batch) statistics.

    x is NC... ; statistics reduce over (N, spatial).
    """
    # TODO(synk): running_mean / running_var (momentum) state updates and
    # eval-mode (running-stat) normalization are not modeled; only the
    # normalization math using batch statistics is implemented.
    N, C = x.shape[0], x.shape[1]
    HW = 1
    for d in x.shape[2:]:
        HW *= d
    x3 = x.reshape(N, C, HW)                              # pure reshape, no transpose
    g3 = gamma.astype(jnp.float32).reshape(1, C, 1)
    b3 = beta.astype(jnp.float32).reshape(1, C, 1)

    vmem_limit, default_budget = _tpu_budgets()
    budget = default_budget if block_budget_bytes is None else block_budget_bytes
    fused_budget = (vmem_limit // 8) if block_budget_bytes is None else block_budget_bytes

    tc_min = 8 if C % 8 == 0 else C
    hw_pad = _round_up(HW, 128)
    fused_min_bytes = N * tc_min * hw_pad * 4             # f32-equivalent smallest block

    if fused_min_bytes <= fused_budget:
        # ------------------ fused single-pass path (1R + 1W of x) ------------------
        if C % 8 == 0:
            tc = min(C, max(8, _round_down(fused_budget // (N * hw_pad * 4), 8)))
            if C >= 16:                          # >=2 grid steps so v7x megacore shards C
                tc = max(8, min(tc, _round_down(C // 2, 8)))
        else:
            tc = C
        kern = functools.partial(_bn_fused_kernel, eps=float(eps),
                                 inv_count=1.0 / float(N * HW))
        y = pl.pallas_call(
            kern,
            out_shape=jax.ShapeDtypeStruct(x3.shape, x.dtype),
            grid=(pl.cdiv(C, tc),),
            in_specs=[
                pl.BlockSpec((N, tc, HW), lambda c: (0, c, 0)),
                pl.BlockSpec((1, tc, 1), lambda c: (0, c, 0)),
                pl.BlockSpec((1, tc, 1), lambda c: (0, c, 0)),
            ],
            out_specs=pl.BlockSpec((N, tc, HW), lambda c: (0, c, 0)),
            compiler_params=pltpu.CompilerParams(
                dimension_semantics=("parallel",),
                vmem_limit_bytes=vmem_limit),
        )(x3, g3, b3)
        return y.reshape(x.shape)

    # ------------------ streamed two-pass path (large N*H*W) ------------------
    # TODO(synk): E[x^2]-mean^2 in f32 can lose precision if |mean| >> std.
    tc = tc_min
    per_col_bytes = N * _round_up(tc, 8) * 4
    thw = max(128, _round_down(budget // max(per_col_bytes, 1), 128))
    if thw >= HW:
        thw = HW
    n_hw = pl.cdiv(HW, thw)

    stats_kern = functools.partial(_bn_stats_kernel, hw_total=HW, thw=thw)
    s, q = pl.pallas_call(
        stats_kern,
        out_shape=(jax.ShapeDtypeStruct((1, C, 1), jnp.float32),
                   jax.ShapeDtypeStruct((1, C, 1), jnp.float32)),
        grid=(pl.cdiv(C, tc), n_hw),
        in_specs=[pl.BlockSpec((N, tc, thw), lambda c, k: (0, c, k))],
        out_specs=(pl.BlockSpec((1, tc, 1), lambda c, k: (0, c, 0)),
                   pl.BlockSpec((1, tc, 1), lambda c, k: (0, c, 0))),
        compiler_params=pltpu.CompilerParams(
            dimension_semantics=("parallel", "arbitrary"),
            vmem_limit_bytes=vmem_limit),
    )(x3)

    count = float(N * HW)
    mean = s / count
    var = jnp.maximum(q / count - mean * mean, 0.0)
    scale = g3 * jax.lax.rsqrt(var + eps)                 # tiny (C-sized) XLA ops
    shift = b3 - mean * scale

    y = pl.pallas_call(
        _affine_apply_kernel,
        out_shape=jax.ShapeDtypeStruct(x3.shape, x.dtype),
        grid=(pl.cdiv(C, tc), n_hw),
        in_specs=[
            pl.BlockSpec((N, tc, thw), lambda c, k: (0, c, k)),
            pl.BlockSpec((1, tc, 1), lambda c, k: (0, c, 0)),
            pl.BlockSpec((1, tc, 1), lambda c, k: (0, c, 0)),
        ],
        out_specs=pl.BlockSpec((N, tc, thw), lambda c, k: (0, c, k)),
        compiler_params=pltpu.CompilerParams(
            dimension_semantics=("parallel", "parallel"),
            vmem_limit_bytes=vmem_limit),
    )(x3, scale, shift)
    return y.reshape(x.shape)


def identity_norm(x):
    return x


# ----------------------------------------------------------------------------
# Normalization "module" mirroring the PyTorch class
# ----------------------------------------------------------------------------
class NormArgs:
    pass


class IdentityNormArgs(NormArgs):
    pass


class GroupNormArgs(NormArgs):
    def __init__(self, affine=True, eps=1e-5, num_groups=None, num_per_group=None):
        self.affine = affine
        self.eps = eps
        self.num_groups = num_groups
        self.num_per_group = num_per_group


class BatchNormArgs(NormArgs):
    def __init__(self, affine=True, eps=1e-5, momentum=0.01, cardinality=2):
        self.affine = affine
        self.eps = eps
        self.momentum = momentum
        self.cardinality = cardinality


class SyncBatchNormArgs(BatchNormArgs):
    def __init__(self, affine=True, eps=1e-5, momentum=0.01, cardinality=2,
                 process_group=None):
        super().__init__(affine=affine, eps=eps, momentum=momentum,
                         cardinality=cardinality)
        self.process_group = process_group


def calculate_group_norm_groups(args, in_channels):
    if args.num_groups is not None:
        assert in_channels % args.num_groups == 0
        return args.num_groups
    assert args.num_per_group is not None
    assert in_channels % args.num_per_group == 0
    return in_channels // args.num_per_group


class Normalization:
    """JAX/Pallas equivalent of the PyTorch `Normalization` module (forward only)."""

    def __init__(self, norm_channels, norm_args):
        self.norm_channels = norm_channels
        self.norm_args = norm_args
        # PyTorch default init: weight=1, bias=0
        self.gamma = jnp.ones((norm_channels,), jnp.float32)
        self.beta = jnp.zeros((norm_channels,), jnp.float32)
        if isinstance(norm_args, GroupNormArgs):
            self.num_groups = calculate_group_norm_groups(norm_args, norm_channels)
        # TODO(synk): SyncBatchNorm cross-device stat sync (process_group) is not
        # implemented; on a single device it reduces to BatchNorm semantics.

    def __call__(self, x):
        a = self.norm_args
        if isinstance(a, IdentityNormArgs):
            return identity_norm(x)
        if isinstance(a, GroupNormArgs):
            g = self.gamma if a.affine else jnp.ones_like(self.gamma)
            b = self.beta if a.affine else jnp.zeros_like(self.beta)
            return group_norm(x, g, b, self.num_groups, a.eps)
        if isinstance(a, BatchNormArgs):  # also covers SyncBatchNormArgs
            assert a.cardinality in (2, 3)
            g = self.gamma if a.affine else jnp.ones_like(self.gamma)
            b = self.beta if a.affine else jnp.zeros_like(self.beta)
            return batch_norm(x, g, b, a.eps)
        raise NotImplementedError


# ----------------------------------------------------------------------------
# Pure-JAX references (correctness checks)
# ----------------------------------------------------------------------------
def _group_norm_ref(x, gamma, beta, G, eps):
    N, C = x.shape[0], x.shape[1]
    sp = x.shape[2:]
    xr = x.reshape((N, G, C // G) + sp)
    red_axes = tuple(range(2, xr.ndim))
    m = xr.mean(axis=red_axes, keepdims=True)
    v = ((xr - m) ** 2).mean(axis=red_axes, keepdims=True)
    y = ((xr - m) / jnp.sqrt(v + eps)).reshape(x.shape)
    shape = (1, C) + (1,) * len(sp)
    return y * gamma.reshape(shape) + beta.reshape(shape)


def _batch_norm_ref(x, gamma, beta, eps):
    axes = (0,) + tuple(range(2, x.ndim))
    m = x.mean(axis=axes, keepdims=True)
    v = ((x - m) ** 2).mean(axis=axes, keepdims=True)
    y = (x - m) / jnp.sqrt(v + eps)
    shape = (1, x.shape[1]) + (1,) * (x.ndim - 2)
    return y * gamma.reshape(shape) + beta.reshape(shape)


if __name__ == "__main__":
    key = jax.random.PRNGKey(0)
    k1, k2, k3, k4, k5 = jax.random.split(key, 5)

    # --- GroupNorm (f32), general fused path ---------------------------------
    x = jax.random.normal(k1, (2, 4, 16, 16), jnp.float32)  # NCHW
    gn_mod = Normalization(4, GroupNormArgs(num_per_group=2))
    gn_mod.gamma = jnp.arange(1.0, 5.0, dtype=jnp.float32) * 0.5
    gn_mod.beta = jnp.arange(0.0, 4.0, dtype=jnp.float32) * 0.1
    y_gn = jax.block_until_ready(gn_mod(x))
    ref_gn = _group_norm_ref(x, gn_mod.gamma, gn_mod.beta, gn_mod.num_groups, 1e-5)
    assert jnp.allclose(y_gn, ref_gn, atol=1e-3, rtol=1e-3)

    # --- GroupNorm (bf16 activations, f32 compute inside kernel) -------------
    x_bf16 = x.astype(jnp.bfloat16)
    y_gn16 = jax.block_until_ready(gn_mod(x_bf16))
    assert y_gn16.dtype == jnp.bfloat16
    ref_gn16 = _group_norm_ref(x_bf16.astype(jnp.float32), gn_mod.gamma,
                               gn_mod.beta, gn_mod.num_groups, 1e-5)
    assert jnp.allclose(y_gn16.astype(jnp.float32), ref_gn16, atol=3e-2, rtol=3e-2)

    # --- GroupNorm, small-Cg lane-dense row path (Cg=2, G=16) ----------------
    x_row = jax.random.normal(k4, (8, 32, 8, 8), jnp.float32)
    g_row = jnp.linspace(0.5, 1.5, 32, dtype=jnp.float32)
    b_row = jnp.linspace(-0.2, 0.2, 32, dtype=jnp.float32)
    y_row = jax.block_until_ready(group_norm(x_row, g_row, b_row, 16, 1e-5))
    ref_row = _group_norm_ref(x_row, g_row, b_row, 16, 1e-5)
    assert jnp.allclose(y_row, ref_row, atol=1e-3, rtol=1e-3)

    # --- GroupNorm, streamed two-pass fallback (forced, ragged HW chunks) ----
    x_gs = jax.random.normal(k5, (2, 4, 12, 12), jnp.float32)  # HW=144
    y_gs = jax.block_until_ready(
        group_norm(x_gs, gn_mod.gamma, gn_mod.beta, 2, 1e-5, block_budget_bytes=1))
    ref_gs = _group_norm_ref(x_gs, gn_mod.gamma, gn_mod.beta, 2, 1e-5)
    assert jnp.allclose(y_gs, ref_gs, atol=1e-3, rtol=1e-3)

    # --- BatchNorm2d, fused path (training-mode batch statistics) ------------
    bn_mod = Normalization(4, BatchNormArgs(cardinality=2))
    bn_mod.gamma = jnp.array([1.0, 0.5, 2.0, 1.5], jnp.float32)
    bn_mod.beta = jnp.array([0.0, 0.1, -0.1, 0.2], jnp.float32)
    y_bn = jax.block_until_ready(bn_mod(x))
    ref_bn = _batch_norm_ref(x, bn_mod.gamma, bn_mod.beta, 1e-5)
    assert jnp.allclose(y_bn, ref_bn, atol=1e-3, rtol=1e-3)

    # --- BatchNorm2d, streamed two-pass path (forced, ragged HW chunks) ------
    x_s = jax.random.normal(k2, (2, 8, 12, 12), jnp.float32)  # HW=144, ragged vs 128
    g_s = jnp.linspace(0.5, 1.5, 8, dtype=jnp.float32)
    b_s = jnp.linspace(-0.2, 0.2, 8, dtype=jnp.float32)
    y_s = jax.block_until_ready(
        batch_norm(x_s, g_s, b_s, eps=1e-5, block_budget_bytes=1))
    ref_s = _batch_norm_ref(x_s, g_s, b_s, 1e-5)
    assert jnp.allclose(y_s, ref_s, atol=1e-3, rtol=1e-3)

    # --- BatchNorm3d ----------------------------------------------------------
    x3d = jax.random.normal(k3, (2, 4, 4, 8, 8), jnp.float32)  # NCDHW
    bn3_mod = Normalization(4, BatchNormArgs(cardinality=3))
    y_bn3 = jax.block_until_ready(bn3_mod(x3d))
    ref_bn3 = _batch_norm_ref(x3d, bn3_mod.gamma, bn3_mod.beta, 1e-5)
    assert jnp.allclose(y_bn3, ref_bn3, atol=1e-3, rtol=1e-3)

    # --- Identity -------------------------------------------------------------
    id_mod = Normalization(4, IdentityNormArgs())
    y_id = jax.block_until_ready(id_mod(x))
    assert jnp.allclose(y_id, x)

    print("KERNEL_OK")
</pallas_src>

<mosaic_0001>
module attributes {stable_mosaic.version = 11 : i64} {
  func.func @_group_norm_kernel(%arg0: i32, %arg1: i32, %arg2: memref<2x1x2x256xf32, #tpu.memory_space<vmem>>, %arg3: memref<1x1x2x1xf32, #tpu.memory_space<vmem>>, %arg4: memref<1x1x2x1xf32, #tpu.memory_space<vmem>>, %arg5: memref<2x1x2x256xf32, #tpu.memory_space<vmem>>) attributes {dimension_semantics = [#tpu.dimension_semantics<parallel>, #tpu.dimension_semantics<parallel>], iteration_bounds = array<i64: 2, 1>, scalar_prefetch = 0 : i64, scratch_operands = 0 : i64, tpu.core_type = #tpu.core_type<tc>, window_params = [{transform_indices = @transform_0, window_bounds = array<i64: 2, 1, 2, 256>}, {transform_indices = @transform_1, window_bounds = array<i64: 1, 1, 2, 1>}, {transform_indices = @transform_2, window_bounds = array<i64: 1, 1, 2, 1>}, {transform_indices = @transform_3, window_bounds = array<i64: 2, 1, 2, 256>}]} {
    %c0 = arith.constant 0 : index
    %c0_0 = arith.constant 0 : index
    %c0_1 = arith.constant 0 : index
    %c0_2 = arith.constant 0 : index
    %0 = vector.load %arg2[%c0, %c0_0, %c0_1, %c0_2] : memref<2x1x2x256xf32, #tpu.memory_space<vmem>>, vector<2x1x2x256xf32>
    %cst = arith.constant dense<0.000000e+00> : vector<2x1x2xf32>
    %1 = vector.multi_reduction <add>, %0, %cst [3] : vector<2x1x2x256xf32> to vector<2x1x2xf32>
    %2 = vector.shape_cast %1 : vector<2x1x2xf32> to vector<2x1x2x1xf32>
    %cst_3 = arith.constant dense<0.000000e+00> : vector<2x1x1xf32>
    %3 = vector.multi_reduction <add>, %2, %cst_3 [2] : vector<2x1x2x1xf32> to vector<2x1x1xf32>
    %4 = vector.shape_cast %3 : vector<2x1x1xf32> to vector<2x1x1x1xf32>
    %5 = arith.mulf %0, %0 : vector<2x1x2x256xf32>
    %cst_4 = arith.constant dense<0.000000e+00> : vector<2x1x2xf32>
    %6 = vector.multi_reduction <add>, %5, %cst_4 [3] : vector<2x1x2x256xf32> to vector<2x1x2xf32>
    %7 = vector.shape_cast %6 : vector<2x1x2xf32> to vector<2x1x2x1xf32>
    %cst_5 = arith.constant dense<0.000000e+00> : vector<2x1x1xf32>
    %8 = vector.multi_reduction <add>, %7, %cst_5 [2] : vector<2x1x2x1xf32> to vector<2x1x1xf32>
    %9 = vector.shape_cast %8 : vector<2x1x1xf32> to vector<2x1x1x1xf32>
    %cst_6 = arith.constant 0.001953125 : f32
    %10 = vector.broadcast %cst_6 : f32 to vector<2x1x1x1xf32>
    %11 = arith.mulf %4, %10 : vector<2x1x1x1xf32>
    %cst_7 = arith.constant 0.001953125 : f32
    %12 = vector.broadcast %cst_7 : f32 to vector<2x1x1x1xf32>
    %13 = arith.mulf %9, %12 : vector<2x1x1x1xf32>
    %14 = arith.mulf %11, %11 : vector<2x1x1x1xf32>
    %15 = arith.subf %13, %14 : vector<2x1x1x1xf32>
    %cst_8 = arith.constant 0.000000e+00 : f32
    %16 = vector.broadcast %cst_8 : f32 to vector<2x1x1x1xf32>
    %17 = arith.maximumf %15, %16 : vector<2x1x1x1xf32>
    %cst_9 = arith.constant 9.99999974E-6 : f32
    %18 = vector.broadcast %cst_9 : f32 to vector<2x1x1x1xf32>
    %19 = arith.addf %17, %18 : vector<2x1x1x1xf32>
    %20 = math.rsqrt %19 : vector<2x1x1x1xf32>
    %c0_10 = arith.constant 0 : index
    %c0_11 = arith.constant 0 : index
    %c0_12 = arith.constant 0 : index
    %c0_13 = arith.constant 0 : index
    %21 = vector.load %arg3[%c0_10, %c0_11, %c0_12, %c0_13] : memref<1x1x2x1xf32, #tpu.memory_space<vmem>>, vector<1x1x2x1xf32>
    %22 = vector.broadcast %20 : vector<2x1x1x1xf32> to vector<2x1x2x1xf32>
    %23 = vector.broadcast %21 : vector<1x1x2x1xf32> to vector<2x1x2x1xf32>
    %24 = arith.mulf %22, %23 : vector<2x1x2x1xf32>
    %c0_14 = arith.constant 0 : index
    %c0_15 = arith.constant 0 : index
    %c0_16 = arith.constant 0 : index
    %c0_17 = arith.constant 0 : index
    %25 = vector.load %arg4[%c0_14, %c0_15, %c0_16, %c0_17] : memref<1x1x2x1xf32, #tpu.memory_space<vmem>>, vector<1x1x2x1xf32>
    %26 = vector.broadcast %11 : vector<2x1x1x1xf32> to vector<2x1x2x1xf32>
    %27 = arith.mulf %26, %24 : vector<2x1x2x1xf32>
    %28 = vector.broadcast %25 : vector<1x1x2x1xf32> to vector<2x1x2x1xf32>
    %29 = arith.subf %28, %27 : vector<2x1x2x1xf32>
    %30 = vector.broadcast %24 : vector<2x1x2x1xf32> to vector<2x1x2x256xf32>
    %31 = arith.mulf %0, %30 : vector<2x1x2x256xf32>
    %32 = vector.broadcast %29 : vector<2x1x2x1xf32> to vector<2x1x2x256xf32>
    %33 = arith.addf %31, %32 : vector<2x1x2x256xf32>
    %c0_18 = arith.constant 0 : index
    %c0_19 = arith.constant 0 : index
    %c0_20 = arith.constant 0 : index
    %c0_21 = arith.constant 0 : index
    %34 = vector.load %arg5[%c0_18, %c0_19, %c0_20, %c0_21] : memref<2x1x2x256xf32, #tpu.memory_space<vmem>>, vector<2x1x2x256xf32>
    tpu.vector_store %arg5[%c0_18, %c0_19, %c0_20, %c0_21], %33 {strides = array<i32>} : memref<2x1x2x256xf32, #tpu.memory_space<vmem>>, vector<2x1x2x256xf32>,
    return
  }
  func.func @transform_0(%arg0: i32, %arg1: i32) -> (i32, i32, i32, i32) {
    %c0_i32 = arith.constant 0 : i32
    %c0_i32_0 = arith.constant 0 : i32
    %c0_i32_1 = arith.constant 0 : i32
    return %arg1, %arg0, %c0_i32, %c0_i32_0 : i32, i32, i32, i32
  }
  func.func @transform_1(%arg0: i32, %arg1: i32) -> (i32, i32, i32, i32) {
    %c0_i32 = arith.constant 0 : i32
    %c0_i32_0 = arith.constant 0 : i32
    %c0_i32_1 = arith.constant 0 : i32
    %c0_i32_2 = arith.constant 0 : i32
    return %c0_i32, %arg0, %c0_i32_0, %c0_i32_1 : i32, i32, i32, i32
  }
  func.func @transform_2(%arg0: i32, %arg1: i32) -> (i32, i32, i32, i32) {
    %c0_i32 = arith.constant 0 : i32
    %c0_i32_0 = arith.constant 0 : i32
    %c0_i32_1 = arith.constant 0 : i32
    %c0_i32_2 = arith.constant 0 : i32
    return %c0_i32, %arg0, %c0_i32_0, %c0_i32_1 : i32, i32, i32, i32
  }
  func.func @transform_3(%arg0: i32, %arg1: i32) -> (i32, i32, i32, i32) {
    %c0_i32 = arith.constant 0 : i32
    %c0_i32_0 = arith.constant 0 : i32
    %c0_i32_1 = arith.constant 0 : i32
    return %arg1, %arg0, %c0_i32, %c0_i32_0 : i32, i32, i32, i32
  }
}

</mosaic_0001>

<bundles_post_ra>
// kernel: tpu_custom_call.1
= control target key start
LH: loop header
LB: loop body
LE: loop exit
PB: predicated region body
PF: predicated region fallthrough
CT: control target
= control target key end

     0   :  { %8 = vsyncpa [#allocation3], 0  ;;  %s931_s0 = inlined_call_operand.hbm [shape: f32[2,2,2,256], index: 0, kind: input, shape index: {}]   ;;  %s932_s1 = inlined_call_operand.vmem [shape: f32[1,2,2,1], index: 1, kind: input, shape index: {}]   ;;  %s933_s2 = inlined_call_operand.vmem [shape: f32[1,2,2,1], index: 2, kind: input, shape index: {}]   ;;  %s934_s3 = inlined_call_operand.hbm [shape: f32[2,2,2,256], index: 3, kind: output, shape index: {}]  }
   0x1   :  { %10 = vsyncpa [#allocation3 + $0x1], 0 }
   0x2   :  { %11 = vsyncpa [#allocation4], 0 }
   0x3   :  { %13 = vsyncpa [#allocation4 + $0x1], 0  ;;  %s775_s12 = smov 0   ;;  %s777_s13 = smov 0  }
   0x4   :  { %s779_s14 = smov 0   ;;  %s781_s15 = smov 0  }
   0x5   :  { %s783_s16 = smov 0   ;;  %s785_s17 = smov 0  }
   0x6 LB: > { %s537_s18 = sadd.s32 4294967295, %s745_s17   ;;  %s538_s19 = sadd.s32 4294967294, %s745_s17   ;;  %s745_s17 = sphi %s785_s17, %s19_s17   ;;  %s741_s16 = sphi %s783_s16, %s943_s16   ;;  %s737_s15 = sphi %s781_s15, %s942_s15   ;;  %s733_s14 = sphi %s779_s14, %s941_s14   ;;  %s729_s13 = sphi %s777_s13, %s940_s13   ;;  %s725_s12 = sphi %s775_s12, %s939_s12  }
   0x7   : > { %s31_s20 = sadd.s32 1, %s741_s16  ;;  %s40_s21 = sadd.s32 1, %s733_s14 }
   0x8   : > { %p33_p0 = scmp.ge.s32.totalorder %s31_s20, 2  ;;  %p47_p1 = scmp.ne.s32.totalorder %s733_s14, %s729_s13 }
   0x9   : > { %p48_p2 = scmp.eq.s32.totalorder %s745_s17, 0  ;;  %p53_p3 = scmp.ne.s32.totalorder %s729_s13, %s725_s12 }
   0xa   : > { %s945_s20 = smov (%p33_p0, %s31_s20), 0  ;;  %p54_p5 = scmp.eq.s32.totalorder %s537_s18, 0 }
   0xb   : > { %p816_p4 = por %p48_p2, %p47_p1  ;;  %s36_s23 = ssub.s32 %s741_s16, %s945_s20 }
   0xc   : > { %p131_p6 = scmp.eq.s32.totalorder %s537_s18, 1  ;;  %p38_p7 = scmp.eq.s32.totalorder %s36_s23, 0 }
   0xd   : > { %p822_p8 = por %p54_p5, %p53_p3  ;;  %p137_p10 = scmp.eq.s32.totalorder %s538_s19, 1 }
   0xe   : > { %p826_p9 = por %p131_p6, %p47_p1  ;;  %p540_p12 = scmp.ge.s32.totalorder %s745_s17, 2 }
   0xf   : > { %s831_s26 = scalar_select %p38_p7, %s733_s14, %s40_s21  }
  0x10   : > { %p833_p11 = por %p137_p10, %p53_p3  ;;  %p568_p13 = scmp.lt.s32.totalorder %s745_s17, 2 }
  0x11   : > { %s157_s28 = sand.u32 1, %s733_s14   ;;  %s554_s30 = sshll.u32 %s741_s16, 2 }
  0x12   : > { %s541_s29 = sshll.u32 %s157_s28, 3  ;;  %s169_s6 = scalar_lea.hbm %s931_s0, %s554_s30 }
  0x13   : > { %s161_s7 = scalar_lea.vmem [#allocation2], %s541_s29  ;;  %s170_s9 = sshll.u32 %s169_s6, 4  ;;  %s171_s9 = int_to_ptr.hbm [resolvable:$true] %s170_s9 }
  0x14   : > { %s172_s8 = sshll.u32 %s161_s7, 4  ;;  %p561_p0 = pnand %p568_p13, %p816_p4  ;;  %s173_s8 = int_to_ptr.vmem [resolvable:$true] %s172_s8 }
  0x15   : > { %s158_s10 = scalar_lea.sflag [#allocation3], %s157_s28  ;;  %s747_s11 = smov 128  }
  0x16   : > { %s748_s18 = smov 64   ;;  %s749_s19 = smov 4  }
  0x17   : > { %563 = dma.hbm_to_vmem [thread:$0]  (!%p561_p0), %s171_s9, 128, %s173_s8, %s158_s10, %s747_s11, %s748_s18, %s749_s19  }
  0x18   : > { %p544_p1 = scmp.ge.s32.totalorder %s745_s17, 1  ;;  %p194_p2 = scmp.lt.s32.totalorder %s745_s17, 3 }
  0x1a   : > { %p195_p3 = pnand %p544_p1, %p194_p2 }
  0x1b   : > { %s849_s21 = sand.u32 (!%p195_p3), 1, %s729_s13  }
  0x1c   : > { %198 = sbr.rel (%p195_p3) target bundleno = 347 (0x15b), region = 32  ;;  %s545_s23 = sshll.u32 (!%p195_p3), %s849_s21, 3 }
  0x1d   : > { %s201_s29 = scalar_lea.sflag (!%p195_p3), [#allocation3], %s849_s21  ;;  %s204_s22 = scalar_lea.vmem (!%p195_p3), [#allocation2], %s545_s23 }
  0x21   : > { %716 = dma.done.wait (%p822_p8), %s201_s29, 128  }
  0x22   : > { %718 = vsyncadd (%p822_p8), %s201_s29, 4294967168  ;;  %v859_v0 = vld [vmem:[%s204_s22] sm:$0xf]  ;;  %v861_v1 = vld [vmem:[%s204_s22 + $0x4] sm:$0xf]  ;;  %vm261_vm0 = vcmask 1041408  }
  0x23   : > { %250 = vst [vmem:[#allocation1] ss:$4 sm:$0xff] %v859_v0  ;;  %v286_v2 = vmul.f32 %v859_v0, %v859_v0  ;;  %v287_v3 = vmul.f32 %v861_v1, %v861_v1  ;;  %v750_v42 = vmov 0   ;;  %p237_p4 = scmp.lt.s32.totalorder %s737_s15, 1  ;;  %s555_s9 = sshll.u32 %s737_s15, 2 }
  0x24   : > { %254 = vst [vmem:[#allocation1 + $0x20] ss:$4 sm:$0xff] %v861_v1  ;;  %626 = vset.pattern.permute.xlu2 %v750_v42  ;;  %627 = vset.pattern.permute.xlu0 %v750_v42  ;;  %s422_s18 = scalar_lea.hbm %s934_s3, %s555_s9  ;;  %s235_s19 = scalar_lea.vmem [#allocation5], %s545_s23 }
  0x25   : > { %628 = vset.pattern.permute.xlu1 %v750_v42  ;;  %s238_s24 = scalar_select %p237_p4, %s737_s15, 1 }
  0x26   : > { %s423_s29 = sshll.u32 %s235_s19, 4  ;;  %s425_s22 = sshll.u32 %s422_s18, 4  ;;  %s424_s29 = int_to_ptr.vmem [resolvable:$true] %s423_s29  ;;  %s426_s22 = int_to_ptr.hbm [resolvable:$true] %s425_s22 }
  0x27   : > { %s547_s28 = sshll.u32 %s238_s24, 1  ;;  %s408_s15 = scalar_lea.sflag [#allocation4], %s849_s21 }
  0x28   : > { %s240_s5 = scalar_lea.vmem %s932_s1, %s547_s28  ;;  %s244_s8 = scalar_lea.vmem %s933_s2, %s547_s28 }
  0x29   : > { %s677_s24 = sshra.s32 %s426_s22, 4  ;;  %s683_s4 = scalar_lea.hbm %s934_s3, 16  ;;  %s678_s24 = int_to_ptr.hbm [resolvable:$true] %s677_s24 }
  0x2a   : > { %v251_v4 = vld.sshfl [vmem:[#allocation1] sm:$0xff pattern:$0x73625140]  ;;  %v252_v5 = vld.sshfl [vmem:[#allocation1 + $0x8] sm:$0xff pattern:$0x73625140]  ;;  %p684_p8 = scmp.lt.s32.totalorder %s678_s24, %s934_s3 }
  0x2b   : > { %v262_v6 = vsel %vm261_vm0, %v251_v4, 0.0  ;;  %v263_v7 = vsel %vm261_vm0, %v252_v5, 0.0  ;;  %290 = vst [vmem:[#allocation1] ss:$4 sm:$0xff] %v286_v2  ;;  %s679_s28 = scalar_lea.hbm %s678_s24, 8 }
  0x2c   : > { %v264_v8 = vadd.f32 %v263_v7, %v262_v6  ;;  %v255_v9 = vld.sshfl [vmem:[#allocation1 + $0x20] sm:$0xff pattern:$0x73625140]  ;;  %v256_v10 = vld.sshfl [vmem:[#allocation1 + $0x28] sm:$0xff pattern:$0x73625140]  ;;  %p680_p5 = scmp.ne.s32.totalorder %s678_s24, %s679_s28  ;;  %p685_p10 = scmp.lt.s32.totalorder %s683_s4, %s679_s28 }
  0x2d   : > { %294 = vst [vmem:[#allocation1 + $0x20] ss:$4 sm:$0xff] %v287_v3  ;;  %v267_v11 = vsel %vm261_vm0, %v255_v9, 0.0  ;;  %v268_v12 = vsel %vm261_vm0, %v256_v10, 0.0 }
  0x2e   : > { %265 = vadd.xlane.f32.xlu0 %v264_v8  ;;  %v269_v15 = vadd.f32 %v268_v12, %v267_v11  ;;  %p681_p6 = pnand %p680_p5, %p826_p9  ;;  %p686_p13 = por %p685_p10, %p684_p8 }
  0x30   : > { %p682_p7 = pneg %p681_p6 }
  0x32   : > { %v291_v13 = vld.sshfl [vmem:[#allocation1] sm:$0xff pattern:$0x73625140]  ;;  %v292_v14 = vld.sshfl [vmem:[#allocation1 + $0x8] sm:$0xff pattern:$0x73625140]  ;;  %p687_p0 = pnand %p686_p13, %p682_p7 }
  0x33   : > { %v301_v16 = vsel %vm261_vm0, %v291_v13, 0.0  ;;  %v302_v17 = vsel %vm261_vm0, %v292_v14, 0.0 }
  0x34   : > { %v303_v18 = vadd.f32 %v302_v17, %v301_v16  ;;  %v295_v19 = vld.sshfl [vmem:[#allocation1 + $0x20] sm:$0xff pattern:$0x73625140]  ;;  %v296_v20 = vld.sshfl [vmem:[#allocation1 + $0x28] sm:$0xff pattern:$0x73625140] }
  0x35   : > { %v306_v21 = vsel %vm261_vm0, %v295_v19, 0.0  ;;  %v307_v22 = vsel %vm261_vm0, %v296_v20, 0.0  ;;  %v360_v20 = vld [vmem:[%s244_s8] sm:$0x3] }
  0x36   : > { %304 = vadd.xlane.f32.xlu1 %v303_v18  ;;  %270 = vadd.xlane.f32.xlu0 %v269_v15  ;;  %v308_v23 = vadd.f32 %v307_v22, %v306_v21  ;;  %v357_v15 = vld [vmem:[%s240_s5] sm:$0x3] }
  0x3e   : > { %309 = vadd.xlane.f32.xlu1 %v308_v23 }
  0xa1   : > { %v266_v24 = vpop.xlane.xlu0 %265 }
  0xa2   : > { %v272_v25 = vsel %vm261_vm0, %v266_v24, 0.0 }
  0xa3   : > { %v273_v26 = vrot.slane %v272_v25, 4 }
  0xa5   : > { %v274_v27 = vadd.f32 %v273_v26, %v272_v25 }
  0xa7   : > { %v275_v28 = vrot.slane %v274_v27, 2 }
  0xa9   : > { %v276_v29 = vadd.f32 %v275_v28, %v274_v27  ;;  %v305_v30 = vpop.xlane.xlu1 %304  ;;  %v271_v31 = vpop.xlane.xlu0 %270 }
  0xaa   : > { %v311_v32 = vsel %vm261_vm0, %v305_v30, 0.0  ;;  %v279_v33 = vsel %vm261_vm0, %v271_v31, 0.0 }
  0xab   : > { %v277_v34 = vrot.slane %v276_v29, 1  ;;  %v312_v35 = vrot.slane %v311_v32, 4  ;;  %v280_v36 = vrot.slane %v279_v33, 4 }
  0xad   : > { %v313_v37 = vadd.f32 %v312_v35, %v311_v32  ;;  %v281_v38 = vadd.f32 %v280_v36, %v279_v33  ;;  %v278_v39 = vadd.f32 %v277_v34, %v276_v29  ;;  %v751_v29 = vmov 269488144  }
  0xae   : > { %v374_v30 = vunpack.c.l.s4 %v751_v29 }
  0xaf   : > { %v314_v40 = vrot.slane %v313_v37, 2  ;;  %v282_v41 = vrot.slane %v281_v38, 2  ;;  %v325_v50 = vmul.f32 0.001953125, %v278_v39 }
  0xb0   : > { %v375_v32 = vunpack.c.0.s8 %v374_v30 }
  0xb1   : > { %v315_v43 = vadd.f32 %v314_v40, %v313_v37  ;;  %v283_v44 = vadd.f32 %v282_v41, %v281_v38  ;;  %v310_v45 = vpop.xlane.xlu1 %309  ;;  %v329_v56 = vmul.f32 %v325_v50, %v325_v50 }
  0xb2   : > { %v318_v46 = vsel %vm261_vm0, %v310_v45, 0.0 }
  0xb3   : > { %v316_v47 = vrot.slane %v315_v43, 1  ;;  %v284_v48 = vrot.slane %v283_v44, 1  ;;  %v319_v49 = vrot.slane %v318_v46, 4 }
  0xb5   : > { %v317_v51 = vadd.f32 %v316_v47, %v315_v43  ;;  %v320_v52 = vadd.f32 %v319_v49, %v318_v46  ;;  %v285_v54 = vadd.f32 %v284_v48, %v283_v44 }
  0xb7   : > { %v327_v53 = vmul.f32 0.001953125, %v317_v51  ;;  %v321_v55 = vrot.slane %v320_v52, 2  ;;  %v326_v59 = vmul.f32 0.001953125, %v285_v54 }
  0xb9   : > { %v322_v57 = vadd.f32 %v321_v55, %v320_v52  ;;  %v331_v58 = vsub.f32 %v327_v53, %v329_v56  ;;  %v330_v2 = vmul.f32 %v326_v59, %v326_v59 }
  0xbb   : > { %v323_v60 = vrot.slane %v322_v57, 1  ;;  %v333_v61 = vmax.f32 %v331_v58, 0.0 }
  0xbd   : > { %v324_v62 = vadd.f32 %v323_v60, %v322_v57  ;;  %v335_v63 = vadd.f32 1e-05, %v333_v61 }
  0xbf   : > { %v328_v3 = vmul.f32 0.001953125, %v324_v62  ;;  %629 = vrsqrt.f32 %v335_v63  ;;  %vm343_vm2 = vweird.f32 %v335_v63 }
  0xc1   : > { %v332_v4 = vsub.f32 %v328_v3, %v330_v2 }
  0xc3   : > { %v334_v5 = vmax.f32 %v332_v4, 0.0 }
  0xc5   : > { %v630_v6 = vpop.eup %629  ;;  %v336_v7 = vadd.f32 1e-05, %v334_v5 }
  0xc6   : > { %v338_v8 = vmul.f32 %v630_v6, %v335_v63  ;;  %vm344_vm1 = vweird.f32 %v630_v6 }
  0xc7   : > { %631 = vrsqrt.f32 %v336_v7  ;;  %vm345_vm3 = vmor %vm343_vm2, %vm344_vm1  ;;  %vm353_vm5 = vweird.f32 %v336_v7 }
  0xc8   : > { %v339_v9 = vmul.f32 %v630_v6, %v338_v8 }
  0xca   : > { %v340_v10 = vmul.f32 0.5, %v339_v9 }
  0xcc   : > { %v341_v11 = vsub.f32 1.5, %v340_v10 }
  0xcd   : > { %v632_v12 = vpop.eup %631 }
  0xce   : > { %v348_v13 = vmul.f32 %v632_v12, %v336_v7  ;;  %v342_v14 = vmul.f32 %v630_v6, %v341_v11  ;;  %vm354_vm4 = vweird.f32 %v632_v12 }
  0xcf   : > { %vm355_vm6 = vmor %vm353_vm5, %vm354_vm4 }
  0xd0   : > { %v346_v16 = vsel %vm345_vm3, %v630_v6, %v342_v14  ;;  %v349_v17 = vmul.f32 %v632_v12, %v348_v13 }
  0xd1   : > { %v358_v18 = vmul.f32 %v357_v15, %v346_v16 }
  0xd2   : > { %v350_v19 = vmul.f32 0.5, %v349_v17 }
  0xd3   : > { %367 = vperm.xlu2 %626, %v358_v18   ;;  %v361_v21 = vmul.f32 %v358_v18, %v325_v50 }
  0xd4   : > { %v351_v22 = vsub.f32 1.5, %v350_v19 }
  0xd5   : > { %v363_v23 = vsub.f32 %v360_v20, %v361_v21 }
  0xd6   : > { %v352_v24 = vmul.f32 %v632_v12, %v351_v22 }
  0xd7   : > { %387 = vperm.xlu0 %627, %v363_v23  }
  0xd8   : > { %v356_v25 = vsel %vm355_vm6, %v632_v12, %v352_v24 }
  0xd9   : > { %v359_v26 = vmul.f32 %v357_v15, %v356_v25 }
  0xdb   : > { %v362_v27 = vmul.f32 %v359_v26, %v326_v59  ;;  %371 = vperm.xlu2 %626, %v359_v26  }
  0xdd   : > { %v364_v28 = vsub.f32 %v360_v20, %v362_v27 }
  0xdf   : > { %391 = vperm.xlu1 %628, %v364_v28  }
 0x12d   : > { %v368_v31 = vpop.permute.xlu2 %367 }
 0x12e   : > { %v376_v33 = vperm.slane %v368_v31, %v375_v32 }
 0x130   : > { %v383_v35 = vmul.f32 %v376_v33, %v859_v0 }
 0x135   : > { %v372_v37 = vpop.permute.xlu2 %371 }
 0x136   : > { %v380_v39 = vperm.slane %v372_v37, %v375_v32 }
 0x138   : > { %v384_v41 = vmul.f32 %v380_v39, %v861_v1 }
 0x149   : > { %v388_v34 = vpop.permute.xlu0 %387 }
 0x14a   : > { %v396_v36 = vperm.slane %v388_v34, %v375_v32 }
 0x14c   : > { %v403_v38 = vadd.f32 %v396_v36, %v383_v35 }
 0x14e   : > { %405 = vst [vmem:[%s235_s19] sm:$0xf] %v403_v38 }
 0x151   : > { %v392_v40 = vpop.permute.xlu1 %391 }
 0x152   : > { %v400_v0 = vperm.slane %v392_v40, %v375_v32 }
 0x154   : > { %v404_v42 = vadd.f32 %v400_v0, %v384_v41 }
 0x156   : > { %406 = vst [vmem:[%s235_s19 + $0x4] sm:$0xf] %v404_v42 }
 0x157   : > { %690 = shalt.err (!%p687_p0)
}
 0x158   : > { %s752_s21 = smov 64   ;;  %s753_s7 = smov 128  }
 0x159   : > { %s754_s8 = smov 4  }
 0x15a   : > { %558 = dma.vmem_to_hbm [thread:$0]  (%p826_p9), %s424_s29, 128, %s426_s22, %s408_s15, %s752_s21, %s753_s7, %s754_s8  }
 0x15b PF: > { %s440_s9 = sand.u32 1, %s725_s12   ;;  %p565_p1 = pnand %p540_p12, %p833_p11 }
 0x15c   : > { %s441_s10 = scalar_lea.sflag [#allocation4], %s440_s9 }
 0x15d   : > { %p566_p2 = pneg %p565_p1 }
 0x15f   : > { %720 = dma.done.wait (%p566_p2), %s441_s10, 128  }
 0x160   : > { %722 = vsyncadd (%p566_p2), %s441_s10, 4294967168  ;;  %s19_s17 = sadd.s32 1, %s745_s17   ;;  %s939_s12 = smov %s729_s13 }
 0x161   : > { %p16_p3 = scmp.ge.s32.totalorder %s19_s17, 4   ;;  %s940_s13 = smov %s733_s14 }
 0x162   : > { %s941_s14 = smov %s831_s26  ;;  %s942_s15 = smov %s741_s16 }
 0x163   : > { %s943_s16 = smov %s945_s20  ;;  %18 = sbr.rel (!%p16_p3) target bundleno = 6 (0x6), region = 85 }
 0x168   :  { %447 = vsyncpa [#allocation3], 1 }
 0x169   :  { %449 = vsyncpa [#allocation3 + $0x1], 1 }
 0x16a   :  { %450 = vsyncpa [#allocation4], 1 }
 0x16b   :  { %452 = vsyncpa [#allocation4 + $0x1], 1 }

</bundles_post_ra>
